<compile_context>
chip_gen: v6e
topology: v6e:2x2x1
jax: 0.10.0
libtpu: 0.0.40
codegen_flags: <defaults>
</compile_context>

<pallas_src>
import jax
import jax.numpy as jnp
from jax.experimental import pallas as pl
from jax.experimental.pallas import tpu as pltpu


# ---------------------------------------------------------------------------
# Pallas kernel: per-block hot path over Bt examples at once.
#   fused query_mapper -> fused feature_mapper ->
#   sigmoid(Q @ F^T) * (time_weights*mask) -> weighted pooling over features ->
#   cls head (Linear -> ReLU -> Linear, output padded to 128 lanes)
# ---------------------------------------------------------------------------
def _evaluator_kernel(q_ref, k_ref, v_ref, cw_ref,
                      wq_ref, bq_ref, wf_ref, bf_ref,
                      wc1_ref, bc1_ref, wc2_ref, bc2_ref,
                      out_ref):
    Bt, Nq, Qd = q_ref.shape
    _, Nf, Fd = k_ref.shape
    E = wq_ref.shape[1]
    Lp = out_ref.shape[-1]

    # fused query mapper on a flattened (Bt*Nq, Q) slab
    q2d = q_ref[...].reshape(Bt * Nq, Qd)
    qm = (jnp.dot(q2d, wq_ref[...], preferred_element_type=jnp.float32)
          + bq_ref[...]).reshape(Bt, Nq, E)

    # fused feature mapper on a flattened (Bt*Nf, F) slab
    k2d = k_ref[...].reshape(Bt * Nf, Fd)
    fm = (jnp.dot(k2d, wf_ref[...], preferred_element_type=jnp.float32)
          + bf_ref[...]).reshape(Bt, Nf, E)

    # attention scores: batched contraction on last dims (no transpose)
    scores = jax.lax.dot_general(
        qm, fm,
        dimension_numbers=(((2,), (2,)), ((0,), (0,))),
        preferred_element_type=jnp.float32)                    # (Bt, Nq, Nf)

    # combined time-decay * attention-mask weight, broadcast over queries
    w = jax.nn.sigmoid(scores) * cw_ref[...]                   # (Bt, Nq, Nf)

    # cross pooling:  values.permute(0,1,3,2) @ weights  ==  w @ values
    pooled = jax.lax.dot_general(
        w, v_ref[...],
        dimension_numbers=(((2,), (1,)), ((0,), (0,))),
        preferred_element_type=jnp.float32)                    # (Bt, Nq, F)

    # cls head on a flattened (Bt*Nq, F) slab; Dropout = identity in eval
    p2d = pooled.reshape(Bt * Nq, Fd)
    ch = jnp.maximum(
        jnp.dot(p2d, wc1_ref[...], preferred_element_type=jnp.float32)
        + bc1_ref[...], 0.0)
    out = (jnp.dot(ch, wc2_ref[...], preferred_element_type=jnp.float32)
           + bc2_ref[...])                                     # (Bt*Nq, Lp)
    out_ref[...] = out.reshape(Bt, Nq, Lp)


def vanilla_capacity_evaluator(params, capacities, static_features,
                               dynamic_features, dynamic_feature_values,
                               dynamic_feature_intervals,
                               static_attention_masks=None,
                               dynamic_attention_masks=None,
                               *, e_axis: float, block_batch=None):
    """Full forward: embedding gathers + time decay (glue) + Pallas hot path."""
    B, Nq = capacities.shape
    Ns = static_features.shape[1]
    Nd = dynamic_features.shape[1]
    Nf = Ns + Nd

    if static_attention_masks is None:
        static_attention_masks = jnp.ones_like(static_features)
    if dynamic_attention_masks is None:
        dynamic_attention_masks = jnp.ones_like(dynamic_features)

    # --- embedding lookups (gather glue) ---
    q_emb = jnp.take(params['capacity_embed'], capacities, axis=0)            # (B,Nq,Q)
    sk = jnp.take(params['static_feature_cls_embed'], static_features, axis=0)
    sv = jnp.take(params['static_feature_values_embed'], static_features, axis=0)
    dk = jnp.take(params['dynamic_feature_cls_embed'], dynamic_features, axis=0)
    dv = jnp.take(params['dynamic_feature_values_embed'], dynamic_feature_values, axis=0)

    keys = jnp.concatenate([sk, dk], axis=1)                                   # (B,Nf,F)
    values = jnp.concatenate([sv, dv], axis=1)                                 # (B,Nf,F)

    # --- time weights ('exp' decay) * attention mask, pre-combined ---
    dyn_tw = jnp.exp(-dynamic_feature_intervals.astype(jnp.float32) / e_axis)
    time_weights = jnp.concatenate(
        [jnp.ones((B, Ns), jnp.float32), dyn_tw], axis=1)                      # (B,Nf)
    attn_masks = jnp.concatenate(
        [static_attention_masks, dynamic_attention_masks], axis=1
    ).astype(jnp.float32)                                                      # (B,Nf)
    combined_w = (time_weights * attn_masks).reshape(B, 1, Nf)                 # (B,1,Nf)

    # --- fuse the activation-free stacked Linears of each mapper ---
    wq = params['wq1'] @ params['wq2']
    bq = params['bq1'] @ params['wq2'] + params['bq2']
    wf = params['wf1'] @ params['wf2']
    bf = params['bf1'] @ params['wf2'] + params['bf2']

    # --- pad the cls output to a lane-dense width (multiple of 128) ---
    L = params['bc2'].shape[-1]
    Lp = ((L + 127) // 128) * 128
    wc2p = jnp.pad(params['wc2'], ((0, 0), (0, Lp - L)))
    bc2p = jnp.pad(params['bc2'], ((0, 0), (0, Lp - L)))

    Qd = q_emb.shape[-1]
    Fd = keys.shape[-1]

    # --- batch-block choice: grid length a multiple of 2 when possible ---
    if block_batch is None:
        block_batch = B // 2 if (B % 2 == 0 and B >= 2) else B
    Bt = max(1, min(block_batch, B))
    n_blocks = pl.cdiv(B, Bt)
    Bp = n_blocks * Bt
    if Bp != B:                      # pad batch so the grid tiles evenly
        pad = Bp - B
        q_emb = jnp.pad(q_emb, ((0, pad), (0, 0), (0, 0)))
        keys = jnp.pad(keys, ((0, pad), (0, 0), (0, 0)))
        values = jnp.pad(values, ((0, pad), (0, 0), (0, 0)))
        combined_w = jnp.pad(combined_w, ((0, pad), (0, 0), (0, 0)))

    def seq_spec(n, d):
        return pl.BlockSpec((Bt, n, d), lambda b: (b, 0, 0))

    def full_spec(arr):
        return pl.BlockSpec(arr.shape, lambda b: (0,) * arr.ndim)

    weight_args = [wq, bq, wf, bf,
                   params['wc1'], params['bc1'], wc2p, bc2p]

    out = pl.pallas_call(
        _evaluator_kernel,
        out_shape=jax.ShapeDtypeStruct((Bp, Nq, Lp), jnp.float32),
        grid=(n_blocks,),
        in_specs=[
            seq_spec(Nq, Qd),       # queries
            seq_spec(Nf, Fd),       # keys
            seq_spec(Nf, Fd),       # values
            seq_spec(1, Nf),        # combined time-weights * mask
        ] + [full_spec(w) for w in weight_args],
        out_specs=seq_spec(Nq, Lp),
        compiler_params=pltpu.CompilerParams(dimension_semantics=("parallel",)),
    )(q_emb, keys, values, combined_w, *weight_args)

    return out[:B, :, :L]


# ---------------------------------------------------------------------------
# Pure-JAX reference (mirrors the PyTorch forward, UNFUSED) for correctness.
# ---------------------------------------------------------------------------
def _reference(params, capacities, static_features, dynamic_features,
               dynamic_feature_values, dynamic_feature_intervals, *, e_axis):
    q_emb = jnp.take(params['capacity_embed'], capacities, axis=0)
    sk = jnp.take(params['static_feature_cls_embed'], static_features, axis=0)
    sv = jnp.take(params['static_feature_values_embed'], static_features, axis=0)
    dk = jnp.take(params['dynamic_feature_cls_embed'], dynamic_features, axis=0)
    dv = jnp.take(params['dynamic_feature_values_embed'], dynamic_feature_values, axis=0)
    keys = jnp.concatenate([sk, dk], axis=1)
    values = jnp.concatenate([sv, dv], axis=1)
    B, Ns = static_features.shape
    dyn_tw = jnp.exp(-dynamic_feature_intervals / e_axis)
    tw = jnp.concatenate([jnp.ones((B, Ns), jnp.float32), dyn_tw], axis=1)
    mask = jnp.ones_like(tw)

    qm = (q_emb @ params['wq1'] + params['bq1']) @ params['wq2'] + params['bq2']
    fm = (keys @ params['wf1'] + params['bf1']) @ params['wf2'] + params['bf2']
    scores = jax.nn.sigmoid(jnp.einsum('bqe,bfe->bqf', qm, fm))
    w = scores * tw[:, None, :] * mask[:, None, :]
    pooled = jnp.einsum('bqf,bfd->bqd', w, values)
    ch = jnp.maximum(pooled @ params['wc1'] + params['bc1'], 0.0)
    return ch @ params['wc2'] + params['bc2']


def _init_params(key):
    query_size, query_hidden, embed = 16, 32, 32
    feature_size, feature_hidden = 32, 32
    cls_hidden, num_labels = 32, 4
    n_cap_cls, n_sfc, n_dfc, n_dfv = 12, 10, 10, 10

    ks = jax.random.split(key, 17)
    f = lambda k, shape, s=0.1: (jax.random.normal(k, shape, jnp.float32) * s)
    params = {
        'capacity_embed': f(ks[0], (n_cap_cls, query_size), 1.0),
        'static_feature_cls_embed': f(ks[1], (n_sfc, feature_size), 1.0),
        'static_feature_values_embed': f(ks[2], (n_sfc, feature_size), 1.0),
        'dynamic_feature_cls_embed': f(ks[3], (n_dfc, feature_size), 1.0),
        'dynamic_feature_values_embed': f(ks[4], (n_dfv, feature_size), 1.0),
        # query_mapper (2 stacked Linears, no nonlinearity)
        'wq1': f(ks[5], (query_size, query_hidden)),
        'bq1': f(ks[6], (1, query_hidden)),
        'wq2': f(ks[7], (query_hidden, embed)),
        'bq2': f(ks[8], (1, embed)),
        # feature_mapper
        'wf1': f(ks[9], (feature_size, feature_hidden)),
        'bf1': f(ks[10], (1, feature_hidden)),
        'wf2': f(ks[11], (feature_hidden, embed)),
        'bf2': f(ks[12], (1, embed)),
        # cls head
        'wc1': f(ks[13], (embed, cls_hidden)),
        'bc1': f(ks[14], (1, cls_hidden)),
        'wc2': f(ks[15], (cls_hidden, num_labels)),
        'bc2': f(ks[16], (1, num_labels)),
    }
    return params


if __name__ == "__main__":
    # TODO(synk): num_transformer_blks=0 config chosen; the optional
    # nn.TransformerEncoder branch of the parent module is not implemented.
    key = jax.random.PRNGKey(0)
    pkey, k1, k2, k3, k4, k5 = jax.random.split(key, 6)
    params = _init_params(pkey)

    B, Nq, Ns, Nd = 8, 8, 4, 4
    includeing_days = 7.0
    e_axis = includeing_days / 4.0   # 'exp' time decay axis

    capacities = jax.random.randint(k1, (B, Nq), 0, 12)
    static_features = jax.random.randint(k2, (B, Ns), 0, 10)
    dynamic_features = jax.random.randint(k3, (B, Nd), 0, 10)
    dynamic_feature_values = jax.random.randint(k4, (B, Nd), 0, 10)
    dynamic_feature_intervals = jax.random.uniform(
        k5, (B, Nd), jnp.float32, 0.0, includeing_days)

    out = vanilla_capacity_evaluator(
        params, capacities, static_features, dynamic_features,
        dynamic_feature_values, dynamic_feature_intervals, e_axis=e_axis)
    out = jax.block_until_ready(out)

    ref = _reference(params, capacities, static_features, dynamic_features,
                     dynamic_feature_values, dynamic_feature_intervals,
                     e_axis=e_axis)
    assert out.shape == (B, Nq, 4)
    assert jnp.allclose(out, ref, atol=1e-5, rtol=1e-5)
    print("KERNEL_OK")
</pallas_src>

<mosaic_0001>
module attributes {stable_mosaic.version = 11 : i64} {
  func.func @_evaluator_kernel(%arg0: i32, %arg1: memref<4x8x16xf32, #tpu.memory_space<vmem>>, %arg2: memref<4x8x32xf32, #tpu.memory_space<vmem>>, %arg3: memref<4x8x32xf32, #tpu.memory_space<vmem>>, %arg4: memref<4x1x8xf32, #tpu.memory_space<vmem>>, %arg5: memref<16x32xf32, #tpu.memory_space<vmem>>, %arg6: memref<1x32xf32, #tpu.memory_space<vmem>>, %arg7: memref<32x32xf32, #tpu.memory_space<vmem>>, %arg8: memref<1x32xf32, #tpu.memory_space<vmem>>, %arg9: memref<32x32xf32, #tpu.memory_space<vmem>>, %arg10: memref<1x32xf32, #tpu.memory_space<vmem>>, %arg11: memref<32x128xf32, #tpu.memory_space<vmem>>, %arg12: memref<1x128xf32, #tpu.memory_space<vmem>>, %arg13: memref<4x8x128xf32, #tpu.memory_space<vmem>>) attributes {dimension_semantics = [#tpu.dimension_semantics<parallel>], iteration_bounds = array<i64: 2>, scalar_prefetch = 0 : i64, scratch_operands = 0 : i64, tpu.core_type = #tpu.core_type<tc>, window_params = [{transform_indices = @transform_0, window_bounds = array<i64: 4, 8, 16>}, {transform_indices = @transform_1, window_bounds = array<i64: 4, 8, 32>}, {transform_indices = @transform_2, window_bounds = array<i64: 4, 8, 32>}, {transform_indices = @transform_3, window_bounds = array<i64: 4, 1, 8>}, {pipeline_mode = #tpu.pipeline_mode<synchronous>, transform_indices = @transform_4, window_bounds = array<i64: 16, 32>}, {pipeline_mode = #tpu.pipeline_mode<synchronous>, transform_indices = @transform_5, window_bounds = array<i64: 1, 32>}, {pipeline_mode = #tpu.pipeline_mode<synchronous>, transform_indices = @transform_6, window_bounds = array<i64: 32, 32>}, {pipeline_mode = #tpu.pipeline_mode<synchronous>, transform_indices = @transform_7, window_bounds = array<i64: 1, 32>}, {pipeline_mode = #tpu.pipeline_mode<synchronous>, transform_indices = @transform_8, window_bounds = array<i64: 32, 32>}, {pipeline_mode = #tpu.pipeline_mode<synchronous>, transform_indices = @transform_9, window_bounds = array<i64: 1, 32>}, {pipeline_mode = #tpu.pipeline_mode<synchronous>, transform_indices = @transform_10, window_bounds = array<i64: 32, 128>}, {pipeline_mode = #tpu.pipeline_mode<synchronous>, transform_indices = @transform_11, window_bounds = array<i64: 1, 128>}, {transform_indices = @transform_12, window_bounds = array<i64: 4, 8, 128>}]} {
    %c0 = arith.constant 0 : index
    %c0_0 = arith.constant 0 : index
    %c0_1 = arith.constant 0 : index
    %0 = vector.load %arg1[%c0, %c0_0, %c0_1] : memref<4x8x16xf32, #tpu.memory_space<vmem>>, vector<4x8x16xf32>
    %1 = vector.shape_cast %0 : vector<4x8x16xf32> to vector<32x16xf32>
    %c0_2 = arith.constant 0 : index
    %c0_3 = arith.constant 0 : index
    %2 = vector.load %arg5[%c0_2, %c0_3] : memref<16x32xf32, #tpu.memory_space<vmem>>, vector<16x32xf32>
    %cst = arith.constant dense<0.000000e+00> : vector<32x32xf32>
    %3 = tpu.matmul %1, %2, %cst {dimension_numbers = #tpu.dot_dimension_numbers<[1], [0], [0], [1], [0, 0, 1, 1], [], []>} : vector<32x16xf32>, vector<16x32xf32>, vector<32x32xf32> -> vector<32x32xf32>
    %c0_4 = arith.constant 0 : index
    %c0_5 = arith.constant 0 : index
    %4 = vector.load %arg6[%c0_4, %c0_5] : memref<1x32xf32, #tpu.memory_space<vmem>>, vector<1x32xf32>
    %5 = vector.broadcast %4 : vector<1x32xf32> to vector<32x32xf32>
    %6 = arith.addf %3, %5 : vector<32x32xf32>
    %7 = vector.shape_cast %6 : vector<32x32xf32> to vector<4x8x32xf32>
    %c0_6 = arith.constant 0 : index
    %c0_7 = arith.constant 0 : index
    %c0_8 = arith.constant 0 : index
    %8 = vector.load %arg2[%c0_6, %c0_7, %c0_8] : memref<4x8x32xf32, #tpu.memory_space<vmem>>, vector<4x8x32xf32>
    %9 = vector.shape_cast %8 : vector<4x8x32xf32> to vector<32x32xf32>
    %c0_9 = arith.constant 0 : index
    %c0_10 = arith.constant 0 : index
    %10 = vector.load %arg7[%c0_9, %c0_10] : memref<32x32xf32, #tpu.memory_space<vmem>>, vector<32x32xf32>
    %cst_11 = arith.constant dense<0.000000e+00> : vector<32x32xf32>
    %11 = tpu.matmul %9, %10, %cst_11 {dimension_numbers = #tpu.dot_dimension_numbers<[1], [0], [0], [1], [0, 0, 1, 1], [], []>} : vector<32x32xf32>, vector<32x32xf32>, vector<32x32xf32> -> vector<32x32xf32>
    %c0_12 = arith.constant 0 : index
    %c0_13 = arith.constant 0 : index
    %12 = vector.load %arg8[%c0_12, %c0_13] : memref<1x32xf32, #tpu.memory_space<vmem>>, vector<1x32xf32>
    %13 = vector.broadcast %12 : vector<1x32xf32> to vector<32x32xf32>
    %14 = arith.addf %11, %13 : vector<32x32xf32>
    %15 = vector.shape_cast %14 : vector<32x32xf32> to vector<4x8x32xf32>
    %cst_14 = arith.constant dense<0.000000e+00> : vector<4x8x8xf32>
    %16 = tpu.matmul %7, %15, %cst_14 {dimension_numbers = #tpu.dot_dimension_numbers<[2], [2], [1], [1], [0, 0, 0, 1, 1, 1], [0], [0]>} : vector<4x8x32xf32>, vector<4x8x32xf32>, vector<4x8x8xf32> -> vector<4x8x8xf32>
    %17 = arith.negf %16 : vector<4x8x8xf32>
    %18 = math.exp %17 : vector<4x8x8xf32>
    %cst_15 = arith.constant 1.000000e+00 : f32
    %19 = vector.broadcast %cst_15 : f32 to vector<4x8x8xf32>
    %20 = arith.addf %19, %18 : vector<4x8x8xf32>
    %21 = arith.divf %19, %20 : vector<4x8x8xf32>
    %c0_16 = arith.constant 0 : index
    %c0_17 = arith.constant 0 : index
    %c0_18 = arith.constant 0 : index
    %22 = vector.load %arg4[%c0_16, %c0_17, %c0_18] : memref<4x1x8xf32, #tpu.memory_space<vmem>>, vector<4x1x8xf32>
    %23 = vector.broadcast %22 : vector<4x1x8xf32> to vector<4x8x8xf32>
    %24 = arith.mulf %21, %23 : vector<4x8x8xf32>
    %c0_19 = arith.constant 0 : index
    %c0_20 = arith.constant 0 : index
    %c0_21 = arith.constant 0 : index
    %25 = vector.load %arg3[%c0_19, %c0_20, %c0_21] : memref<4x8x32xf32, #tpu.memory_space<vmem>>, vector<4x8x32xf32>
    %cst_22 = arith.constant dense<0.000000e+00> : vector<4x8x32xf32>
    %26 = tpu.matmul %24, %25, %cst_22 {dimension_numbers = #tpu.dot_dimension_numbers<[2], [1], [1], [2], [0, 0, 0, 1, 1, 2], [0], [0]>} : vector<4x8x8xf32>, vector<4x8x32xf32>, vector<4x8x32xf32> -> vector<4x8x32xf32>
    %27 = vector.shape_cast %26 : vector<4x8x32xf32> to vector<32x32xf32>
    %c0_23 = arith.constant 0 : index
    %c0_24 = arith.constant 0 : index
    %28 = vector.load %arg9[%c0_23, %c0_24] : memref<32x32xf32, #tpu.memory_space<vmem>>, vector<32x32xf32>
    %cst_25 = arith.constant dense<0.000000e+00> : vector<32x32xf32>
    %29 = tpu.matmul %27, %28, %cst_25 {dimension_numbers = #tpu.dot_dimension_numbers<[1], [0], [0], [1], [0, 0, 1, 1], [], []>} : vector<32x32xf32>, vector<32x32xf32>, vector<32x32xf32> -> vector<32x32xf32>
    %c0_26 = arith.constant 0 : index
    %c0_27 = arith.constant 0 : index
    %30 = vector.load %arg10[%c0_26, %c0_27] : memref<1x32xf32, #tpu.memory_space<vmem>>, vector<1x32xf32>
    %31 = vector.broadcast %30 : vector<1x32xf32> to vector<32x32xf32>
    %32 = arith.addf %29, %31 : vector<32x32xf32>
    %cst_28 = arith.constant 0.000000e+00 : f32
    %33 = vector.broadcast %cst_28 : f32 to vector<32x32xf32>
    %34 = arith.maximumf %32, %33 : vector<32x32xf32>
    %c0_29 = arith.constant 0 : index
    %c0_30 = arith.constant 0 : index
    %35 = vector.load %arg11[%c0_29, %c0_30] : memref<32x128xf32, #tpu.memory_space<vmem>>, vector<32x128xf32>
    %cst_31 = arith.constant dense<0.000000e+00> : vector<32x128xf32>
    %36 = tpu.matmul %34, %35, %cst_31 {dimension_numbers = #tpu.dot_dimension_numbers<[1], [0], [0], [1], [0, 0, 1, 1], [], []>} : vector<32x32xf32>, vector<32x128xf32>, vector<32x128xf32> -> vector<32x128xf32>
    %c0_32 = arith.constant 0 : index
    %c0_33 = arith.constant 0 : index
    %37 = vector.load %arg12[%c0_32, %c0_33] : memref<1x128xf32, #tpu.memory_space<vmem>>, vector<1x128xf32>
    %38 = vector.broadcast %37 : vector<1x128xf32> to vector<32x128xf32>
    %39 = arith.addf %36, %38 : vector<32x128xf32>
    %40 = vector.shape_cast %39 : vector<32x128xf32> to vector<4x8x128xf32>
    %c0_34 = arith.constant 0 : index
    %c0_35 = arith.constant 0 : index
    %c0_36 = arith.constant 0 : index
    %41 = vector.load %arg13[%c0_34, %c0_35, %c0_36] : memref<4x8x128xf32, #tpu.memory_space<vmem>>, vector<4x8x128xf32>
    tpu.vector_store %arg13[%c0_34, %c0_35, %c0_36], %40 {strides = array<i32>} : memref<4x8x128xf32, #tpu.memory_space<vmem>>, vector<4x8x128xf32>,
    return
  }
  func.func @transform_0(%arg0: i32) -> (i32, i32, i32) {
    %c0_i32 = arith.constant 0 : i32
    %c0_i32_0 = arith.constant 0 : i32
    %c0_i32_1 = arith.constant 0 : i32
    return %arg0, %c0_i32, %c0_i32_0 : i32, i32, i32
  }
  func.func @transform_1(%arg0: i32) -> (i32, i32, i32) {
    %c0_i32 = arith.constant 0 : i32
    %c0_i32_0 = arith.constant 0 : i32
    %c0_i32_1 = arith.constant 0 : i32
    return %arg0, %c0_i32, %c0_i32_0 : i32, i32, i32
  }
  func.func @transform_2(%arg0: i32) -> (i32, i32, i32) {
    %c0_i32 = arith.constant 0 : i32
    %c0_i32_0 = arith.constant 0 : i32
    %c0_i32_1 = arith.constant 0 : i32
    return %arg0, %c0_i32, %c0_i32_0 : i32, i32, i32
  }
  func.func @transform_3(%arg0: i32) -> (i32, i32, i32) {
    %c0_i32 = arith.constant 0 : i32
    %c0_i32_0 = arith.constant 0 : i32
    %c0_i32_1 = arith.constant 0 : i32
    return %arg0, %c0_i32, %c0_i32_0 : i32, i32, i32
  }
  func.func @transform_4(%arg0: i32) -> (i32, i32) {
    %c0_i32 = arith.constant 0 : i32
    %c0_i32_0 = arith.constant 0 : i32
    %c0_i32_1 = arith.constant 0 : i32
    return %c0_i32, %c0_i32_0 : i32, i32
  }
  func.func @transform_5(%arg0: i32) -> (i32, i32) {
    %c0_i32 = arith.constant 0 : i32
    %c0_i32_0 = arith.constant 0 : i32
    %c0_i32_1 = arith.constant 0 : i32
    return %c0_i32, %c0_i32_0 : i32, i32
  }
  func.func @transform_6(%arg0: i32) -> (i32, i32) {
    %c0_i32 = arith.constant 0 : i32
    %c0_i32_0 = arith.constant 0 : i32
    %c0_i32_1 = arith.constant 0 : i32
    return %c0_i32, %c0_i32_0 : i32, i32
  }
  func.func @transform_7(%arg0: i32) -> (i32, i32) {
    %c0_i32 = arith.constant 0 : i32
    %c0_i32_0 = arith.constant 0 : i32
    %c0_i32_1 = arith.constant 0 : i32
    return %c0_i32, %c0_i32_0 : i32, i32
  }
  func.func @transform_8(%arg0: i32) -> (i32, i32) {
    %c0_i32 = arith.constant 0 : i32
    %c0_i32_0 = arith.constant 0 : i32
    %c0_i32_1 = arith.constant 0 : i32
    return %c0_i32, %c0_i32_0 : i32, i32
  }
  func.func @transform_9(%arg0: i32) -> (i32, i32) {
    %c0_i32 = arith.constant 0 : i32
    %c0_i32_0 = arith.constant 0 : i32
    %c0_i32_1 = arith.constant 0 : i32
    return %c0_i32, %c0_i32_0 : i32, i32
  }
  func.func @transform_10(%arg0: i32) -> (i32, i32) {
    %c0_i32 = arith.constant 0 : i32
    %c0_i32_0 = arith.constant 0 : i32
    %c0_i32_1 = arith.constant 0 : i32
    return %c0_i32, %c0_i32_0 : i32, i32
  }
  func.func @transform_11(%arg0: i32) -> (i32, i32) {
    %c0_i32 = arith.constant 0 : i32
    %c0_i32_0 = arith.constant 0 : i32
    %c0_i32_1 = arith.constant 0 : i32
    return %c0_i32, %c0_i32_0 : i32, i32
  }
  func.func @transform_12(%arg0: i32) -> (i32, i32, i32) {
    %c0_i32 = arith.constant 0 : i32
    %c0_i32_0 = arith.constant 0 : i32
    %c0_i32_1 = arith.constant 0 : i32
    return %arg0, %c0_i32, %c0_i32_0 : i32, i32, i32
  }
}

</mosaic_0001>

<bundles_post_ra>
// kernel: tpu_custom_call.1
= control target key start
LH: loop header
LB: loop body
LE: loop exit
PB: predicated region body
PF: predicated region fallthrough
CT: control target
= control target key end

     0   :  { %s3082_s0 = inlined_call_operand.hbm [shape: f32[8,8,16], index: 0, kind: input, shape index: {}]   ;;  %s3083_s1 = inlined_call_operand.hbm [shape: f32[8,8,32], index: 1, kind: input, shape index: {}]   ;;  %s3084_s2 = inlined_call_operand.hbm [shape: f32[8,8,32], index: 2, kind: input, shape index: {}]   ;;  %s3085_s3 = inlined_call_operand.hbm [shape: f32[8,1,8], index: 3, kind: input, shape index: {}]   ;;  %s3086_s4 = inlined_call_operand.hbm [shape: f32[16,32], index: 4, kind: input, shape index: {}]   ;;  %s3087_s5 = inlined_call_operand.vmem [shape: f32[1,32], index: 5, kind: input, shape index: {}]   ;;  %s3088_s6 = inlined_call_operand.hbm [shape: f32[32,32], index: 6, kind: input, shape index: {}]   ;;  %s3089_s7 = inlined_call_operand.vmem [shape: f32[1,32], index: 7, kind: input, shape index: {}]   ;;  %s3090_s8 = inlined_call_operand.hbm [shape: f32[32,32], index: 8, kind: input, shape index: {}]   ;;  %s3091_s9 = inlined_call_operand.vmem [shape: f32[1,32], index: 9, kind: input, shape index: {}]   ;;  %s3092_s10 = inlined_call_operand.hbm [shape: f32[32,128], index: 10, kind: input, shape index: {}]   ;;  %s3093_s11 = inlined_call_operand.vmem [shape: f32[1,128], index: 11, kind: input, shape index: {}]   ;;  %s3094_s12 = inlined_call_operand.hbm [shape: f32[8,8,128], index: 12, kind: output, shape index: {}]  }
   0x1   :  { %3115 = sst [smem:[#allocation30_spill]] %s3083_s1 }
   0x2   :  { %3116 = sst [smem:[#allocation31_spill]] %s3086_s4 }
   0x3   :  { %3117 = sst [smem:[#allocation32_spill]] %s3088_s6 }
   0x4   :  { %3118 = sst [smem:[#allocation33_spill]] %s3090_s8 }
   0x5   :  { %3119 = sst [smem:[#allocation34_spill]] %s3091_s9 }
   0x6   :  { %3120 = sst [smem:[#allocation35_spill]] %s3092_s10 }
   0x7   :  { %3121 = sst [smem:[#allocation36_spill]] %s3093_s11 }
   0x8   :  { %3122 = sst [smem:[#allocation37_spill]] %s3094_s12 }
   0x9   :  { %17 = vsyncpa [#allocation3], 0 }
   0xa   :  { %19 = vsyncpa [#allocation3 + $0x1], 0 }
   0xb   :  { %20 = vsyncpa [#allocation6], 0 }
   0xc   :  { %22 = vsyncpa [#allocation6 + $0x1], 0 }
   0xd   :  { %23 = vsyncpa [#allocation9], 0 }
   0xe   :  { %25 = vsyncpa [#allocation9 + $0x1], 0 }
   0xf   :  { %26 = vsyncpa [#allocation12], 0 }
  0x10   :  { %27 = vsyncpa [#allocation15], 0 }
  0x11   :  { %28 = vsyncpa [#allocation4], 0 }
  0x12   :  { %30 = vsyncpa [#allocation4 + $0x1], 0  ;;  %s2635_s21 = smov 0   ;;  %s2637_s22 = smov 0  }
  0x13   :  { %s2639_s23 = smov 0   ;;  %s2641_s24 = smov 0  }
  0x14 LB: > { %3123 = sst [smem:[#allocation24_spill]] %s2539_s21  ;;  %s2656_s25 = sadd.s32 4294967295, %s2551_s24   ;;  %s2551_s24 = sphi %s2641_s24, %s3164_s24   ;;  %s2547_s23 = sphi %s2639_s23, %s3166_s23   ;;  %s2543_s22 = sphi %s2637_s22, %s3168_s22   ;;  %s2539_s21 = sphi %s2635_s21, %s3167_s21  }
  0x15   : > { %3124 = sst [smem:[#allocation25_spill]] %s2547_s23  ;;  %s1908_s26 = sadd.s32 4294967294, %s2551_s24  }
  0x16   : > { %p56_p0 = scmp.ne.s32.totalorder %s2543_s22, %s2539_s21  ;;  %p3107_p1 = scmp.eq.s32.totalorder %s2656_s25, 0 }
  0x17   : > { %p326_p2 = scmp.eq.s32.totalorder %s2656_s25, 1  ;;  %p332_p3 = scmp.eq.s32.totalorder %s1908_s26, 1 }
  0x18   : > { %p2665_p4 = por %p3107_p1, %p56_p0  ;;  %p1909_p5 = scmp.ge.s32.totalorder %s2551_s24, 1 }
  0x19   : > { %p2670_p6 = por %p332_p3, %p56_p0  ;;  %p339_p7 = scmp.lt.s32.totalorder %s2551_s24, 3 }
  0x1a   : > { %s3125_s27 = scalar_select %p2665_p4, 1, 0 }
  0x1b   : > { %s3126_s28 = scalar_select %p2670_p6, 1, 0 }
  0x1c   : > { %p2675_p8 = pnand %p1909_p5, %p339_p7  ;;  %s2553_s30 = smov [#allocation10]  }
  0x1d   : > { %3127 = sst [smem:[#allocation26_spill]] %s3126_s28  ;;  %s351_s13 = sshll.u32 %s2553_s30, 4  ;;  %s352_s13 = int_to_ptr.vmem [resolvable:$true] %s351_s13 }
  0x1e   : > { %s3128_s29 = scalar_select %p2675_p8, 1, 0 }
  0x1f   : > { %p2151_p9 = pneg %p2675_p8  ;;  %s2554_s15 = smov [#allocation11]  }
  0x20   : > { %s367_s16 = sshll.u32 %s2554_s15, 4  ;;  %s2262_s17 = scalar_lea.vmem %s352_s13, 256  ;;  %s368_s16 = int_to_ptr.vmem [resolvable:$true] %s367_s16 }
  0x21   : > { %p2684_p11 = pnand %p2151_p9, %p3107_p1  ;;  %p2263_p13 = scmp.ne.s32.totalorder %s352_s13, %s2262_s17 }
  0x22   : > { %p2270_p5 = scmp.lt.s32.totalorder %s352_s13, %s352_s13  ;;  %p2271_p7 = scmp.lt.s32.totalorder %s2262_s17, %s2262_s17 }
  0x23   : > { %s3129_s14 = scalar_select %p2684_p11, 1, 0 }
  0x24   : > { %p3108_p12 = pneg %p2684_p11  ;;  %p2272_p10 = por %p2271_p7, %p2270_p5 }
  0x26   : > { %p2265_p0 = pnand %p2263_p13, %p3108_p12 }
  0x28   : > { %p2266_p3 = pneg %p2265_p0 }
  0x2a   : > { %p2273_p9 = pnand %p2272_p10, %p2266_p3 }
  0x2c   : > { %2276 = shalt.err (!%p2273_p9)
}
  0x2d   : > { %s3095_s18 = smov 128   ;;  %s3097_s19 = smov 8  }
  0x2e   : > { %s3130_s4 = sld [smem:[#allocation31_spill]]  ;;  %s2288_s30 = scalar_lea.vmem %s368_s16, 512 }
  0x2f   : > { %p2289_p13 = scmp.ne.s32.totalorder %s368_s16, %s2288_s30  ;;  %p2296_p10 = scmp.lt.s32.totalorder %s368_s16, %s368_s16 }
  0x30   : > { %p2297_p3 = scmp.lt.s32.totalorder %s2288_s30, %s2288_s30 }
  0x31   : > { %p2291_p0 = pnand %p2289_p13, %p3108_p12 }
  0x32   : > { %p2298_p7 = por %p2297_p3, %p2296_p10 }
  0x33   : > { %p2292_p5 = pneg %p2291_p0 }
  0x34   : > { %2154 = dma.hbm_to_vmem [thread:$0]  (!%p2684_p11), %s3130_s4, 256, %s352_s13, [#allocation9], %s3095_s18, %s3095_s18, %s3097_s19  }
  0x35   : > { %p2299_p9 = pnand %p2298_p7, %p2292_p5 }
  0x37   : > { %2302 = shalt.err (!%p2299_p9)
}
  0x38   : > { %s3131_s6 = sld [smem:[#allocation32_spill]]  ;;  %s2713_s13 = sadd.s32 1, %s2551_s24  }
  0x39   : > { %3132 = sst [smem:[#allocation27_spill]] %s2713_s13  ;;  %s43_s20 = sadd.s32 1, %s2547_s23 }
  0x3a   : > { %s40_s26 = ssub.s32 %s2551_s24, %s2713_s13  ;;  %p50_p13 = scmp.ne.s32.totalorder %s2547_s23, %s2543_s22 }
  0x3b   : > { %p41_p0 = scmp.eq.s32.totalorder %s40_s26, 0  ;;  %p51_p5 = scmp.eq.s32.totalorder %s2551_s24, 0 }
  0x3c   : > { %p2723_p10 = por %p326_p2, %p50_p13  ;;  %p2185_p3 = scmp.lt.s32.totalorder %s2551_s24, 2 }
  0x3d   : > { %s2729_s15 = scalar_select %p41_p0, %s2547_s23, %s43_s20  }
  0x3e   : > { %2157 = dma.hbm_to_vmem [thread:$0]  (!%p2684_p11), %s3131_s6, 512, %s368_s16, [#allocation12], %s3095_s18, %s3095_s18, %s3097_s19  }
  0x3f   : > { %s3133_s30 = scalar_select %p2723_p10, 1, 0 }
  0x40   : > { %3135 = sst [smem:[#allocation29_spill]] %s2729_s15  ;;  %p52_p7 = por %p51_p5, %p50_p13 }
  0x41   : > { %3134 = sst [smem:[#allocation28_spill]] %s3133_s30  ;;  %s2732_s17 = sand.u32 1, %s2547_s23  }
  0x42   : > { %s2735_s16 = sshll.u32 %s2732_s17, 5  ;;  %s2738_s18 = sshll.u32 %s2551_s24, 9 }
  0x43   : > { %p2740_p9 = pnand %p2185_p3, %p52_p7  ;;  %s3109_s19 = sand.u32 1, %s2551_s24  }
  0x44   : > { %s3137_s1 = sld [smem:[#allocation30_spill]]  ;;  %s441_s15 = scalar_lea.vmem [#allocation5], %s2735_s16 }
  0x45   : > { %s448_s23 = sshll.u32 %s441_s15, 4  ;;  %s2756_s13 = scalar_lea.sflag [#allocation6], %s3109_s19  ;;  %s2752_s23 = int_to_ptr.vmem [resolvable:$true] %s448_s23 }
  0x46   : > { %p2762_p13 = pneg %p2740_p9 }
  0x4a   : > { %s2749_s20 = scalar_lea.hbm %s3137_s1, %s2738_s18  ;;  %s2308_s15 = scalar_lea.hbm %s3137_s1, 1024 }
  0x4b   : > { %s2303_s28 = scalar_lea.hbm %s2749_s20, 512  ;;  %p2309_p3 = scmp.lt.s32.totalorder %s2749_s20, %s3137_s1 }
  0x4c   : > { %p2304_p2 = scmp.ne.s32.totalorder %s2749_s20, %s2303_s28  ;;  %p2310_p7 = scmp.lt.s32.totalorder %s2308_s15, %s2303_s28 }
  0x4e   : > { %p2306_p0 = pnand %p2762_p13, %p2304_p2  ;;  %p2311_p1 = por %p2310_p7, %p2309_p3 }
  0x50   : > { %p2307_p5 = pneg %p2306_p0 }
  0x52   : > { %p2312_p12 = pnand %p2311_p1, %p2307_p5 }
  0x54   : > { %2315 = shalt.err (!%p2312_p12)
}
  0x55   : > { %s2316_s19 = scalar_lea.vmem %s2752_s23, 512  ;;  %s2557_s11 = smov [#allocation5]  }
  0x56   : > { %p2317_p6 = scmp.ne.s32.totalorder %s2752_s23, %s2316_s19  ;;  %s2321_s4 = sshll.u32 %s2557_s11, 4  ;;  %s2322_s4 = int_to_ptr.vmem [resolvable:$false] %s2321_s4 }
  0x57   : > { %s2323_s6 = scalar_lea.vmem %s2322_s4, 1024  ;;  %p2324_p10 = scmp.lt.s32.totalorder %s2752_s23, %s2322_s4 }
  0x58   : > { %p2319_p2 = pnand %p2317_p6, %p2762_p13  ;;  %p2325_p4 = scmp.lt.s32.totalorder %s2323_s6, %s2316_s19 }
  0x5a   : > { %p2320_p0 = pneg %p2319_p2  ;;  %p2326_p8 = por %p2325_p4, %p2324_p10 }
  0x5c   : > { %p2327_p11 = pnand %p2326_p8, %p2320_p0 }
  0x5e   : > { %2330 = shalt.err (!%p2327_p11)
}
  0x5f   : > { %s3139_s12 = smov 8   ;;  %s3140_s28 = smov 128  }
  0x60   : > { %2170 = dma.hbm_to_vmem [thread:$0]  (!%p2740_p9), %s2749_s20, 512, %s2752_s23, %s2756_s13, %s3140_s28, %s3140_s28, %s3139_s12  }
  0x61   : > { %s2558_s30 = smov [#allocation13]   ;;  %s2559_s11 = smov [#allocation14]  }
  0x62   : > { %s383_s15 = sshll.u32 %s2558_s30, 4  ;;  %s399_s1 = sshll.u32 %s2559_s11, 4  ;;  %s384_s15 = int_to_ptr.vmem [resolvable:$true] %s383_s15  ;;  %s400_s1 = int_to_ptr.vmem [resolvable:$true] %s399_s1 }
  0x63   : > { %s2342_s4 = scalar_lea.vmem %s384_s15, 512  ;;  %p3141_p4 = scmp.ne.s32.totalorder %s3129_s14, 0 }
  0x64   : > { %p2343_p1 = scmp.ne.s32.totalorder %s384_s15, %s2342_s4  ;;  %p2350_p12 = scmp.lt.s32.totalorder %s384_s15, %s384_s15 }
  0x65   : > { %p3142_p6 = pneg %p3141_p4  ;;  %p2351_p10 = scmp.lt.s32.totalorder %s2342_s4, %s2342_s4 }
  0x67   : > { %p2345_p8 = pnand %p2343_p1, %p3142_p6  ;;  %p2352_p5 = por %p2351_p10, %p2350_p12 }
  0x69   : > { %p2346_p11 = pneg %p2345_p8 }
  0x6b   : > { %p2353_p3 = pnand %p2352_p5, %p2346_p11 }
  0x6d   : > { %2356 = shalt.err (!%p2353_p3)
}
  0x6e   : > { %s3143_s8 = sld [smem:[#allocation33_spill]]  ;;  %s2368_s20 = scalar_lea.vmem %s400_s1, 512 }
  0x6f   : > { %p2369_p7 = scmp.ne.s32.totalorder %s400_s1, %s2368_s20  ;;  %p3144_p2 = pmov %p3142_p6 }
  0x70   : > { %p2376_p6 = scmp.lt.s32.totalorder %s400_s1, %s400_s1  ;;  %p2377_p8 = scmp.lt.s32.totalorder %s2368_s20, %s2368_s20 }
  0x71   : > { %p2371_p0 = pnand %p2369_p7, %p3144_p2 }
  0x72   : > { %p2378_p11 = por %p2377_p8, %p2376_p6 }
  0x73   : > { %p2372_p1 = pneg %p2371_p0 }
  0x74   : > { %2160 = dma.hbm_to_vmem [thread:$0]  (!%p3141_p4), %s3143_s8, 512, %s384_s15, [#allocation12], %s3140_s28, %s3140_s28, %s3139_s12  }
  0x75   : > { %p2379_p12 = pnand %p2378_p11, %p2372_p1 }
  0x77   : > { %2382 = shalt.err (!%p2379_p12)
}
  0x78   : > { %s3145_s10 = sld [smem:[#allocation35_spill]]  ;;  %s2814_s4 = scalar_lea.hbm %s3082_s0, %s2738_s18 }
  0x79   : > { %s420_s14 = scalar_lea.vmem [#allocation2], %s2735_s16  ;;  %s2823_s6 = scalar_lea.hbm %s3084_s2, %s2738_s18 }
  0x7a   : > { %s427_s23 = sshll.u32 %s420_s14, 4  ;;  %s417_s30 = scalar_lea.sflag [#allocation3], %s2732_s17  ;;  %s2817_s23 = int_to_ptr.vmem [resolvable:$true] %s427_s23 }
  0x7b   : > { %s2383_s8 = scalar_lea.hbm %s2814_s4, 512  ;;  %s2388_s11 = scalar_lea.hbm %s3082_s0, 1024 }
  0x7c   : > { %p2389_p3 = scmp.lt.s32.totalorder %s2814_s4, %s3082_s0  ;;  %p2390_p7 = scmp.lt.s32.totalorder %s2388_s11, %s2383_s8 }
  0x7e   : > { %2163 = dma.hbm_to_vmem [thread:$0]  (!%p3141_p4), %s3145_s10, 512, %s400_s1, [#allocation15], %s3140_s28, %s3140_s28, %s3139_s12  }
  0x7f   : > { %p2384_p4 = scmp.ne.s32.totalorder %s2814_s4, %s2383_s8  ;;  %p2391_p2 = por %p2390_p7, %p2389_p3 }
  0x81   : > { %p2386_p10 = pnand %p2384_p4, %p2762_p13 }
  0x83   : > { %p2387_p5 = pneg %p2386_p10 }
  0x85   : > { %p2392_p0 = pnand %p2391_p2, %p2387_p5 }
  0x87   : > { %2395 = shalt.err (!%p2392_p0)
}
  0x88   : > { %s2396_s18 = scalar_lea.vmem %s2817_s23, 512  ;;  %s2560_s14 = smov [#allocation2]  }
  0x89   : > { %p2397_p1 = scmp.ne.s32.totalorder %s2817_s23, %s2396_s18  ;;  %s2401_s19 = sshll.u32 %s2560_s14, 4  ;;  %s2402_s19 = int_to_ptr.vmem [resolvable:$false] %s2401_s19 }
  0x8a   : > { %s2403_s20 = scalar_lea.vmem %s2402_s19, 1024  ;;  %p2404_p11 = scmp.lt.s32.totalorder %s2817_s23, %s2402_s19 }
  0x8b   : > { %p2399_p6 = pnand %p2397_p1, %p2762_p13  ;;  %p2405_p12 = scmp.lt.s32.totalorder %s2403_s20, %s2396_s18 }
  0x8d   : > { %p2400_p8 = pneg %p2399_p6  ;;  %p2406_p4 = por %p2405_p12, %p2404_p11 }
  0x8f   : > { %p2407_p10 = pnand %p2406_p4, %p2400_p8 }
  0x91   : > { %2410 = shalt.err (!%p2407_p10)
}
  0x92   : > { %2167 = dma.hbm_to_vmem [thread:$0]  (!%p2740_p9), %s2814_s4, 512, %s2817_s23, %s417_s30, %s3140_s28, %s3140_s28, %s3139_s12  }
  0x93   : > { %s462_s8 = scalar_lea.vmem [#allocation7], %s2735_s16  ;;  %s1924_s10 = sshll.u32 %s2732_s17, 2 }
  0x94   : > { %s469_s9 = sshll.u32 %s462_s8, 4  ;;  %s2411_s1 = scalar_lea.hbm %s2823_s6, 512  ;;  %s470_s9 = int_to_ptr.vmem [resolvable:$true] %s469_s9 }
  0x95   : > { %p2412_p5 = scmp.ne.s32.totalorder %s2823_s6, %s2411_s1  ;;  %s2416_s18 = scalar_lea.hbm %s3084_s2, 1024 }
  0x96   : > { %p2417_p2 = scmp.lt.s32.totalorder %s2823_s6, %s3084_s2  ;;  %p2418_p0 = scmp.lt.s32.totalorder %s2416_s18, %s2411_s1 }
  0x97   : > { %p2414_p3 = pnand %p2412_p5, %p2762_p13 }
  0x98   : > { %p2419_p1 = por %p2418_p0, %p2417_p2 }
  0x99   : > { %p2415_p7 = pneg %p2414_p3 }
  0x9b   : > { %p2420_p6 = pnand %p2419_p1, %p2415_p7 }
  0x9d   : > { %2423 = shalt.err (!%p2420_p6)
}
  0x9e   : > { %s2424_s16 = scalar_lea.vmem %s470_s9, 512  ;;  %s2561_s4 = smov [#allocation7]  }
  0x9f   : > { %p2425_p8 = scmp.ne.s32.totalorder %s470_s9, %s2424_s16  ;;  %s2429_s23 = sshll.u32 %s2561_s4, 4  ;;  %s2430_s23 = int_to_ptr.vmem [resolvable:$false] %s2429_s23 }
  0xa0   : > { %s2431_s30 = scalar_lea.vmem %s2430_s23, 1024  ;;  %p2432_p4 = scmp.lt.s32.totalorder %s470_s9, %s2430_s23 }
  0xa1   : > { %p2427_p11 = pnand %p2425_p8, %p2762_p13  ;;  %p2433_p10 = scmp.lt.s32.totalorder %s2431_s30, %s2424_s16 }
  0xa3   : > { %p2428_p12 = pneg %p2427_p11  ;;  %p2434_p5 = por %p2433_p10, %p2432_p4 }
  0xa5   : > { %p2435_p3 = pnand %p2434_p5, %p2428_p12 }
  0xa7   : > { %2438 = shalt.err (!%p2435_p3)
}
  0xa8   : > { %2173 = dma.hbm_to_vmem [thread:$0]  (!%p2740_p9), %s2823_s6, 512, %s470_s9, %s2756_s13, %s3140_s28, %s3140_s28, %s3139_s12  }
  0xa9   : > { %s1985_s20 = sshll.u32 %s2551_s24, 6  ;;  %s483_s8 = scalar_lea.vmem [#allocation8], %s1924_s10 }
  0xaa   : > { %s490_s1 = sshll.u32 %s483_s8, 4  ;;  %s2877_s18 = scalar_lea.hbm %s3085_s3, %s1985_s20  ;;  %s2879_s1 = int_to_ptr.vmem [resolvable:$true] %s490_s1 }
  0xab   : > { %s3146_s14 = sand.u32 1, %s2551_s24   ;;  %s2439_s16 = scalar_lea.hbm %s2877_s18, 64 }
  0xac   : > { %s2883_s19 = scalar_lea.sflag [#allocation9], %s3146_s14  ;;  %p2440_p7 = scmp.ne.s32.totalorder %s2877_s18, %s2439_s16 }
  0xad   : > { %s2444_s12 = scalar_lea.hbm %s3085_s3, 128  ;;  %p2445_p1 = scmp.lt.s32.totalorder %s2877_s18, %s3085_s3 }
  0xae   : > { %p2442_p2 = pnand %p2440_p7, %p2762_p13  ;;  %p2446_p6 = scmp.lt.s32.totalorder %s2444_s12, %s2439_s16 }
  0xb0   : > { %p2443_p0 = pneg %p2442_p2  ;;  %p2447_p8 = por %p2446_p6, %p2445_p1 }
  0xb2   : > { %p2448_p11 = pnand %p2447_p8, %p2443_p0 }
  0xb4   : > { %2451 = shalt.err (!%p2448_p11)
}
  0xb5   : > { %s2452_s9 = scalar_lea.vmem %s2879_s1, 64  ;;  %s2562_s10 = smov [#allocation8]  }
  0xb6   : > { %p2453_p12 = scmp.ne.s32.totalorder %s2879_s1, %s2452_s9  ;;  %s2457_s4 = sshll.u32 %s2562_s10, 4  ;;  %s2458_s4 = int_to_ptr.vmem [resolvable:$false] %s2457_s4 }
  0xb7   : > { %s2459_s23 = scalar_lea.vmem %s2458_s4, 128  ;;  %p2460_p5 = scmp.lt.s32.totalorder %s2879_s1, %s2458_s4 }
  0xb8   : > { %p2455_p4 = pnand %p2453_p12, %p2762_p13  ;;  %p2461_p3 = scmp.lt.s32.totalorder %s2459_s23, %s2452_s9 }
  0xba   : > { %p2456_p10 = pneg %p2455_p4  ;;  %p2462_p7 = por %p2461_p3, %p2460_p5 }
  0xbc   : > { %p2463_p2 = pnand %p2462_p7, %p2456_p10 }
  0xbe   : > { %2466 = shalt.err (!%p2463_p2)
}
  0xbf   : > { %s2563_s30 = smov 16   ;;  %s2564_s20 = smov 1  }
  0xc0   : > { %2176 = dma.hbm_to_vmem [thread:$0]  (!%p2740_p9), %s2877_s18, 64, %s2879_s1, %s2883_s19, %s2563_s30, %s2563_s30, %s2564_s20  }
  0xc1   : > { %p3147_p13 = scmp.ne.s32.totalorder %s3128_s29, 0 }
  0xc2   : > { %s2909_s21 = sand.u32 (!%p3147_p13), 1, %s2543_s22   ;;  %p3148_p0 = scmp.ne.s32.totalorder (!%p3147_p13), %s3125_s27, 0 }
  0xc3   : > { %502 = sbr.rel (%p3147_p13) target bundleno = 1265 (0x4f1), region = 68  ;;  %s2912_s8 = sshll.u32 (!%p3147_p13), %s2909_s21, 5 }
  0xc4   : > { %s505_s15 = scalar_lea.sflag (!%p3147_p13), [#allocation3], %s2909_s21  ;;  %s2916_s11 = scalar_lea.vmem (!%p3147_p13), [#allocation2], %s2912_s8 }
  0xc8   : > { %2510 = dma.done.wait (%p3148_p0), %s505_s15, 512  }
  0xc9   : > { %2512 = vsyncadd (%p3148_p0), %s505_s15, 4294966784  ;;  %s513_s29 = sand.u32 1, %s2656_s25   ;;  %s2924_s1 = scalar_lea.vmem [#allocation5], %s2912_s8 }
  0xca   : > { %s514_s26 = scalar_lea.sflag [#allocation6], %s513_s29 }
  0xcb   : > { %2514 = dma.done.wait (%p3148_p0), %s514_s26, 1024  }
  0xcc   : > { %2516 = vsyncadd (%p3148_p0), %s514_s26, 4294966272  ;;  %s1931_s18 = sshll.u32 %s2909_s21, 2  ;;  %s2932_s14 = scalar_lea.vmem [#allocation7], %s2912_s8 }
  0xcd   : > { %s532_s19 = scalar_lea.sflag [#allocation9], %s513_s29  ;;  %s2934_s16 = scalar_lea.vmem [#allocation8], %s1931_s18 }
  0xce   : > { %2518 = dma.done.wait (%p3148_p0), %s532_s19, 64  }
  0xcf   : > { %2520 = vsyncadd (%p3148_p0), %s532_s19, 4294967232  ;;  %p3149_p9 = scmp.eq.s32.totalorder %s2656_s25, 0 }
  0xd1   : > { %2522 = dma.done.wait (%p3149_p9), [#allocation9], 256   ;;  %p3150_p1 = pmov %p3149_p9 }
  0xd3   : > { %2524 = vsyncadd (%p3150_p1), [#allocation9], 4294967040  ;;  %p3151_p6 = pmov %p3150_p1 }
  0xd4   : > { %p3152_p8 = pmov %p3150_p1 }
  0xd5   : > { %2526 = dma.done.wait (%p3151_p6), [#allocation12], 1024  }
  0xd6   : > { %2528 = vsyncadd (%p3152_p8), [#allocation12], 4294966272  ;;  %p3153_p11 = pmov %p3150_p1 }
  0xd7   : > { %p3154_p12 = pmov %p3150_p1 }
  0xd8   : > { %2530 = dma.done.wait (%p3153_p11), [#allocation15], 512  }
  0xd9   : > { %2532 = vsyncadd (%p3154_p12), [#allocation15], 4294966784  ;;  %v730_v0 = vld [vmem:[#allocation11 + $0x18] sm:$0xff]  ;;  %v729_v1 = vld [vmem:[#allocation11 + $0x10] sm:$0xff]  ;;  %vm738_vm0 = vcmask 261120   ;;  %vm625_vm1 = vcmask 130048  }
  0xda   : > { %2043 = vmatprep.subr.mxu1 %v730_v0  ;;  %v617_v2 = vld [vmem:[#allocation10 + $0x8] sm:$0xff]  ;;  %v723_v3 = vld [vmem:[%s2924_s1] sm:$0xff]  ;;  %v616_v5 = vld [vmem:[#allocation10] sm:$0xff]  ;;  %v2565_v14 = vmov 0.0   ;;  %vm2566_vm2 = vmmov 0   ;;  %vm1200_vm3 = vcmask 64512  }
  0xdb   : > { %2044 = vmatpush3.msra.mxu1 %v730_v0  ;;  %v728_v4 = vld [vmem:[#allocation11 + $0x8] sm:$0xff]  ;;  %2033 = vmatprep.subr.mxu0 %v617_v2  ;;  %v727_v6 = vld [vmem:[#allocation11] sm:$0xff]  ;;  %v613_v8 = vld [vmem:[%s2916_s11 + $0x8] sm:$0xff]  ;;  %s3155_s9 = sld [smem:[#allocation34_spill]]  ;;  %s606_s30 = scalar_lea.vmem [#allocation16], %s2912_s8 }
  0xdc   : > { %2045 = vmatprep.subr.mxu1 %v729_v1  ;;  %2051 = vmatprep.mubr.msk.f32.mxu1 %vm738_vm0, %v723_v3  ;;  %v612_v7 = vld [vmem:[%s2916_s11] sm:$0xff]  ;;  %v724_v9 = vld [vmem:[%s2924_s1 + $0x8] sm:$0xff]  ;;  %v614_v10 = vld [vmem:[%s2916_s11 + $0x10] sm:$0xff]  ;;  %s3156_s23 = sld [smem:[#allocation36_spill]]  ;;  %s1731_s20 = sshll.u32 %s606_s30, 4  ;;  %s3034_s20 = int_to_ptr.vmem [resolvable:$true] %s1731_s20 }
  0xdd   : > { %2046 = vmatpush3.msra.mxu1 %v729_v1  ;;  %2034 = vmatpush3.msra.mxu0 %v617_v2  ;;  %v725_v11 = vld [vmem:[%s2924_s1 + $0x10] sm:$0xff]  ;;  %v615_v12 = vld [vmem:[%s2916_s11 + $0x18] sm:$0xff]  ;;  %v1942_v18 = vld [vmem:[%s3089_s7] ss:$0 sm:$0xff]  ;;  %s3157_s15 = sld [smem:[#allocation28_spill]]  ;;  %s1986_s11 = sshll.u32 %s2656_s25, 9 }
  0xde   : > { %2047 = vmatprep.subr.mxu1 %v728_v4  ;;  %2035 = vmatprep.subr.mxu0 %v616_v5  ;;  %v726_v13 = vld [vmem:[%s2924_s1 + $0x18] sm:$0xff]  ;;  %v1937_v21 = vld [vmem:[%s3087_s5] ss:$0 sm:$0xff]  ;;  %v1197_v34 = vld [vmem:[%s2932_s14 + $0x8] sm:$0xff]  ;;  %s3158_s1 = sld [smem:[#allocation37_spill]]  ;;  %s1718_s8 = scalar_lea.sflag [#allocation4], %s2909_s21 }
  0xdf   : > { %2048 = vmatpush3.msra.mxu1 %v728_v4  ;;  %2036 = vmatpush3.msra.mxu0 %v616_v5  ;;  %v1196_v33 = vld [vmem:[%s2932_s14] sm:$0xff]  ;;  %v1198_v58 = vld [vmem:[%s2932_s14 + $0x10] sm:$0xff]  ;;  %v1199_v1 = vld [vmem:[%s2932_s14 + $0x18] sm:$0xff]  ;;  %s2467_s14 = scalar_lea.vmem %s3034_s20, 512  ;;  %s2567_s25 = smov [#allocation16]  }
  0xe0   : > { %2049 = vmatprep.subr.mxu1 %v727_v6  ;;  %2037 = vmatprep.mubr.msk.f32.mxu0 %vm625_vm1, %v612_v7  ;;  %v1959_v55 = vld [vmem:[%s2934_s16] ss:$0 sm:$0xff]  ;;  %v1960_v59 = vld [vmem:[%s2934_s16 + $0x1] ss:$0 sm:$0xff]  ;;  %v1496_v60 = vld [vmem:[#allocation13 + $0x18] sm:$0xff]  ;;  %p2468_p4 = scmp.ne.s32.totalorder %s3034_s20, %s2467_s14  ;;  %s2471_s19 = sshll.u32 %s2567_s25, 4  ;;  %s2472_s19 = int_to_ptr.vmem [resolvable:$false] %s2471_s19 }
  0xe1   : > { %2050 = vmatpush3.msra.mxu1 %v727_v6  ;;  %2038 = vmatmul.mubr.msk.f32.vlgmr.msra.gmra.mxu0 %vm625_vm1, %v613_v8  ;;  %v1961_v61 = vld [vmem:[%s2934_s16 + $0x2] ss:$0 sm:$0xff]  ;;  %v1962_v3 = vld [vmem:[%s2934_s16 + $0x3] ss:$0 sm:$0xff]  ;;  %v1495_v4 = vld [vmem:[#allocation13 + $0x10] sm:$0xff]  ;;  %s2473_s16 = scalar_lea.vmem %s2472_s19, 1024  ;;  %p2474_p7 = scmp.lt.s32.totalorder %s3034_s20, %s2472_s19 }
  0xe2   : > { %2052 = vmatmul.mubr.msk.f32.vlgmr.msra.gmra.mxu1 %vm738_vm0, %v724_v9  ;;  %2040 = vmatprep.mubr.msk.f32.mxu0 %vm625_vm1, %v614_v10  ;;  %v1494_v7 = vld [vmem:[#allocation13 + $0x8] sm:$0xff]  ;;  %v1493_v8 = vld [vmem:[#allocation13] sm:$0xff]  ;;  %p2475_p2 = scmp.lt.s32.totalorder %s2473_s16, %s2467_s14 }
  0xe3   : > { %2054 = vmatprep.mubr.msk.f32.mxu1 %vm738_vm0, %v725_v11  ;;  %2057 = vmatprep.subr.mxu0 %v2565_v14  ;;  %p3159_p10 = scmp.ne.s32.totalorder %s3157_s15, 0 }
  0xe4   : > { %2067 = vmatprep.subr.mxu1 %v2565_v14  ;;  %s3039_s18 = scalar_lea.hbm %s3158_s1, %s1986_s11  ;;  %p2476_p13 = por %p2475_p2, %p2474_p7 }
  0xe5   : > { %2041 = vmatmul.mubr.msk.f32.gmra.mxu0 %vm625_vm1, %v615_v12  ;;  %p2469_p5 = pnand %p2468_p4, %p3159_p10 }
  0xe6   : > { %2055 = vmatmul.mubr.msk.f32.gmra.mxu1 %vm738_vm0, %v726_v13  ;;  %2059 = vmatprep.mubr.msk.f32.mxu0 %vm2566_vm2, %v2565_v14 }
  0xe7   : > { %2069 = vmatprep.mubr.msk.f32.mxu1 %vm2566_vm2, %v2565_v14  ;;  %p2470_p3 = pneg %p2469_p5 }
  0xe9   : > { %p2477_p0 = pnand %p2476_p13, %p2470_p3 }
 0x1a1   : > { %v2039_v15 = vpop.f32.mrf.mxu0 }
 0x1a2   : > { %v2053_v16 = vpop.f32.mrf.mxu1  ;;  %v710_v30 = vadd.f32 %v2039_v15, %v1937_v21 }
 0x1a3   : > { %v704_v17 = vpop.f32.mrf.mxu0  ;;  %v823_v27 = vadd.f32 %v2053_v16, %v1942_v18 }
 0x1a4   : > { %v817_v19 = vpop.f32.mrf.mxu1  ;;  %v705_v25 = vadd.f32 %v1937_v21, %v704_v17  ;;  %v1608_v17 = vld [vmem:[#allocation14 + $0x18] sm:$0xff] }
 0x1a5   : > { %v818_v20 = vadd.f32 %v1942_v18, %v817_v19  ;;  %v2042_v22 = vpop.f32.mrf.mxu0  ;;  %v1606_v19 = vld [vmem:[#allocation14 + $0x8] sm:$0xff] }
 0x1a6   : > { %v2056_v23 = vpop.f32.mrf.mxu1  ;;  %v720_v32 = vadd.f32 %v2042_v22, %v1937_v21 }
 0x1a7   : > { %2058 = vmatpush3.xpose.msk.msra.mxu0 %vm738_vm0, %v818_v20  ;;  %v714_v24 = vpop.f32.mrf.mxu0  ;;  %v833_v31 = vadd.f32 %v2056_v23, %v1942_v18  ;;  %v1605_v20 = vld [vmem:[#allocation14] sm:$0xff] }
 0x1a8   : > { %v827_v26 = vpop.f32.mrf.mxu1  ;;  %2062 = vmatprep.subr.mxu0 %v2565_v14  ;;  %v715_v29 = vadd.f32 %v1937_v21, %v714_v24  ;;  %v1967_v21 = vld [vmem:[%s3155_s9] ss:$0 sm:$0xff] }
 0x1a9   : > { %v828_v28 = vadd.f32 %v1942_v18, %v827_v26  ;;  %v1607_v18 = vld [vmem:[#allocation14 + $0x10] sm:$0xff] }
 0x1aa   : > { %2060 = vmatmul.mubr.msk.f32.vlgmr.msra.gmra.mxu0 %vm738_vm0, %v705_v25 }
 0x1ab   : > { %2063 = vmatpush3.xpose.msk.msra.mxu0 %vm738_vm0, %v823_v27  ;;  %2068 = vmatpush3.xpose.msk.msra.mxu1 %vm738_vm0, %v828_v28 }
 0x1ac   : > { %2064 = vmatprep.mubr.msk.f32.mxu0 %vm2566_vm2, %v2565_v14  ;;  %2072 = vmatprep.subr.mxu0 %v2565_v14 }
 0x1ad   : > { %2077 = vmatprep.subr.mxu1 %v2565_v14 }
 0x1ae   : > { %2065 = vmatmul.mubr.msk.f32.vlgmr.msra.gmra.mxu0 %vm738_vm0, %v710_v30  ;;  %2070 = vmatmul.mubr.msk.f32.vlgmr.msra.gmra.mxu1 %vm738_vm0, %v715_v29 }
 0x1af   : > { %2073 = vmatpush3.xpose.msk.msra.mxu0 %vm738_vm0, %v833_v31  ;;  %2074 = vmatprep.mubr.msk.f32.mxu0 %vm2566_vm2, %v2565_v14 }
 0x1b0   : > { %2079 = vmatprep.mubr.msk.f32.mxu1 %vm2566_vm2, %v2565_v14  ;;  %2082 = vmatprep.subr.mxu0 %v2565_v14 }
 0x1b1   : > { %2078 = vmatpush3.msra.mxu1 %v1196_v33 }
 0x1b2   : > { %2075 = vmatmul.mubr.msk.f32.vlgmr.msra.gmra.mxu0 %vm738_vm0, %v720_v32  ;;  %2087 = vmatprep.subr.mxu1 %v2565_v14 }
 0x1b3   : > { %2084 = vmatprep.mubr.msk.f32.mxu0 %vm2566_vm2, %v2565_v14  ;;  %2083 = vmatpush3.msra.mxu0 %v1197_v34  ;;  %v1972_v34 = vld [vmem:[%s3156_s23] ss:$0 sm:$0xff] }
 0x1b4   : > { %2092 = vmatprep.subr.mxu0 %v2565_v14 }
 0x26a   : > { %v908_v35 = vpop.f32.mrf.mxu0 }
 0x26b   : > { %v1955_v36 = vmul.f32 -1.442695, %v908_v35 }
 0x26c   : > { %v2061_v37 = vpop.f32.mrf.mxu0 }
 0x26d   : > { %2235 = vpow2.f32 %v1955_v36 }
 0x26e   : > { %v984_v38 = vpop.f32.mrf.mxu0  ;;  %v1060_v39 = vpop.f32.mrf.mxu1 }
 0x26f   : > { %v1956_v40 = vmul.f32 -1.442695, %v984_v38  ;;  %v1957_v41 = vmul.f32 -1.442695, %v1060_v39 }
 0x270   : > { %v2066_v42 = vpop.f32.mrf.mxu0  ;;  %v2071_v43 = vpop.f32.mrf.mxu1 }
 0x271   : > { %2237 = vpow2.f32 %v1956_v40 }
 0x272   : > { %2239 = vpow2.f32 %v1957_v41  ;;  %v1136_v44 = vpop.f32.mrf.mxu0 }
 0x273   : > { %v1958_v45 = vmul.f32 -1.442695, %v1136_v44 }
 0x274   : > { %v2076_v46 = vpop.f32.mrf.mxu0 }
 0x275   : > { %2241 = vpow2.f32 %v1958_v45 }
 0x27a   : > { %v2236_v47 = vpop.eup %2235 }
 0x27b   : > { %v1152_v48 = vadd.f32 1.0, %v2236_v47 }
 0x27d   : > { %2243 = vrcp.f32 %v1152_v48 }
 0x27e   : > { %v2238_v49 = vpop.eup %2237 }
 0x27f   : > { %v2240_v50 = vpop.eup %2239  ;;  %v1153_v51 = vadd.f32 1.0, %v2238_v49 }
 0x280   : > { %v1154_v52 = vadd.f32 1.0, %v2240_v50 }
 0x281   : > { %2245 = vrcp.f32 %v1153_v51 }
 0x282   : > { %v2242_v53 = vpop.eup %2241  ;;  %2247 = vrcp.f32 %v1154_v52 }
 0x283   : > { %v1155_v54 = vadd.f32 1.0, %v2242_v53 }
 0x285   : > { %2249 = vrcp.f32 %v1155_v54 }
 0x28a   : > { %v2244_v56 = vpop.eup %2243 }
 0x28b   : > { %v1192_v57 = vmul.f32 %v2244_v56, %v1959_v55 }
 0x28d   : > { %2080 = vmatmul.mubr.msk.f32.vlgmr.msra.gmra.mxu1 %vm1200_vm3, %v1192_v57 }
 0x28e   : > { %v2246_v62 = vpop.eup %2245  ;;  %2088 = vmatpush3.msra.mxu1 %v1198_v58  ;;  %2089 = vmatprep.mubr.msk.f32.mxu1 %vm2566_vm2, %v2565_v14 }
 0x28f   : > { %v2248_v63 = vpop.eup %2247  ;;  %v1193_v0 = vmul.f32 %v2246_v62, %v1960_v59  ;;  %2097 = vmatprep.subr.mxu1 %v1496_v60 }
 0x290   : > { %v1194_v2 = vmul.f32 %v2248_v63, %v1961_v61 }
 0x291   : > { %2085 = vmatmul.mubr.msk.f32.vlgmr.msra.gmra.mxu0 %vm1200_vm3, %v1193_v0 }
 0x292   : > { %v2250_v5 = vpop.eup %2249  ;;  %2090 = vmatmul.mubr.msk.f32.vlgmr.msra.gmra.mxu1 %vm1200_vm3, %v1194_v2  ;;  %2093 = vmatpush3.msra.mxu0 %v1199_v1 }
 0x293   : > { %2094 = vmatprep.mubr.msk.f32.mxu0 %vm2566_vm2, %v2565_v14  ;;  %v1195_v6 = vmul.f32 %v2250_v5, %v1962_v3  ;;  %2098 = vmatpush3.msra.mxu1 %v1496_v60 }
 0x294   : > { %2099 = vmatprep.subr.mxu1 %v1495_v4  ;;  %2111 = vmatprep.subr.mxu0 %v1608_v17 }
 0x295   : > { %2095 = vmatmul.mubr.msk.f32.vlgmr.msra.gmra.mxu0 %vm1200_vm3, %v1195_v6  ;;  %2100 = vmatpush3.msra.mxu1 %v1495_v4 }
 0x296   : > { %2101 = vmatprep.subr.mxu1 %v1494_v7  ;;  %2112 = vmatpush3.msra.mxu0 %v1608_v17 }
 0x297   : > { %2102 = vmatpush3.msra.mxu1 %v1494_v7  ;;  %2113 = vmatprep.subr.mxu0 %v1607_v18 }
 0x298   : > { %2103 = vmatprep.subr.mxu1 %v1493_v8  ;;  %2114 = vmatpush3.msra.mxu0 %v1607_v18 }
 0x299   : > { %2104 = vmatpush3.msra.mxu1 %v1493_v8  ;;  %2115 = vmatprep.subr.mxu0 %v1606_v19 }
 0x29a   : > { %2116 = vmatpush3.msra.mxu0 %v1606_v19 }
 0x29b   : > { %2117 = vmatprep.subr.mxu0 %v1605_v20 }
 0x29c   : > { %2118 = vmatpush3.msra.mxu0 %v1605_v20 }
 0x34d   : > { %v1270_v9 = vpop.f32.mrf.mxu1 }
 0x34e   : > { %2105 = vmatprep.mubr.msk.f32.mxu1 %vm738_vm0, %v1270_v9 }
 0x34f   : > { %v2081_v10 = vpop.f32.mrf.mxu1 }
 0x351   : > { %v1343_v11 = vpop.f32.mrf.mxu0 }
 0x352   : > { %2106 = vmatmul.mubr.msk.f32.vlgmr.msra.gmra.mxu1 %vm738_vm0, %v1343_v11  ;;  %v1416_v12 = vpop.f32.mrf.mxu1 }
 0x353   : > { %v2086_v13 = vpop.f32.mrf.mxu0  ;;  %2108 = vmatprep.mubr.msk.f32.mxu1 %vm738_vm0, %v1416_v12 }
 0x354   : > { %v2091_v14 = vpop.f32.mrf.mxu1 }
 0x355   : > { %v1489_v15 = vpop.f32.mrf.mxu0 }
 0x356   : > { %2109 = vmatmul.mubr.msk.f32.gmra.mxu1 %vm738_vm0, %v1489_v15 }
 0x357   : > { %v2096_v16 = vpop.f32.mrf.mxu0 }
 0x412   : > { %v2107_v22 = vpop.f32.mrf.mxu1 }
 0x413   : > { %v1588_v23 = vadd.f32 %v2107_v22, %v1967_v21 }
 0x414   : > { %v1582_v24 = vpop.f32.mrf.mxu1 }
 0x415   : > { %v1583_v25 = vadd.f32 %v1967_v21, %v1582_v24  ;;  %v1602_v28 = vmax.f32 %v1588_v23, 0.0 }
 0x416   : > { %v2110_v26 = vpop.f32.mrf.mxu1 }
 0x417   : > { %v1601_v27 = vmax.f32 %v1583_v25, 0.0  ;;  %v1598_v29 = vadd.f32 %v2110_v26, %v1967_v21 }
 0x418   : > { %v1592_v30 = vpop.f32.mrf.mxu1 }
 0x419   : > { %v1593_v31 = vadd.f32 %v1967_v21, %v1592_v30  ;;  %2119 = vmatprep.mubr.msk.f32.mxu0 %vm738_vm0, %v1601_v27  ;;  %v1604_v33 = vmax.f32 %v1598_v29, 0.0 }
 0x41a   : > { %2120 = vmatmul.mubr.msk.f32.vlgmr.msra.gmra.mxu0 %vm738_vm0, %v1602_v28 }
 0x41b   : > { %v1603_v32 = vmax.f32 %v1593_v31, 0.0 }
 0x41d   : > { %2122 = vmatprep.mubr.msk.f32.mxu0 %vm738_vm0, %v1603_v32 }
 0x41e   : > { %2123 = vmatmul.mubr.msk.f32.gmra.mxu0 %vm738_vm0, %v1604_v33 }
 0x4da   : > { %v2121_v35 = vpop.f32.mrf.mxu0 }
 0x4db   : > { %v1700_v36 = vadd.f32 %v2121_v35, %v1972_v34 }
 0x4dc   : > { %v1694_v37 = vpop.f32.mrf.mxu0 }
 0x4dd   : > { %1714 = vst [vmem:[%s606_s30 + $0x8] sm:$0xff] %v1700_v36  ;;  %v1695_v38 = vadd.f32 %v1972_v34, %v1694_v37 }
 0x4de   : > { %v2124_v39 = vpop.f32.mrf.mxu0 }
 0x4df   : > { %1713 = vst [vmem:[%s606_s30] sm:$0xff] %v1695_v38  ;;  %v1710_v40 = vadd.f32 %v2124_v39, %v1972_v34 }
 0x4e0   : > { %v1704_v41 = vpop.f32.mrf.mxu0 }
 0x4e1   : > { %1716 = vst [vmem:[%s606_s30 + $0x18] sm:$0xff] %v1710_v40  ;;  %v1705_v42 = vadd.f32 %v1972_v34, %v1704_v41 }
 0x4e3   : > { %1715 = vst [vmem:[%s606_s30 + $0x10] sm:$0xff] %v1705_v42 }
 0x4e4   : > { %2480 = shalt.err (!%p2477_p0)
}
 0x4e5   : > { %s2481_s27 = scalar_lea.hbm %s3039_s18, 512  ;;  %s2485_s12 = scalar_lea.hbm %s3158_s1, 1024 }
 0x4e6   : > { %p2482_p9 = scmp.ne.s32.totalorder %s3039_s18, %s2481_s27  ;;  %p2486_p8 = scmp.lt.s32.totalorder %s3039_s18, %s3158_s1 }
 0x4e7   : > { %p2487_p11 = scmp.lt.s32.totalorder %s2485_s12, %s2481_s27 }
 0x4e8   : > { %p2483_p1 = pnand %p2482_p9, %p3159_p10 }
 0x4e9   : > { %p2488_p12 = por %p2487_p11, %p2486_p8 }
 0x4ea   : > { %p2484_p6 = pneg %p2483_p1 }
 0x4ec   : > { %p2489_p4 = pnand %p2488_p12, %p2484_p6 }
 0x4ee   : > { %2492 = shalt.err (!%p2489_p4)
}
 0x4ef   : > { %s2568_s9 = smov 128   ;;  %s2569_s10 = smov 8  }
 0x4f0   : > { %2149 = dma.vmem_to_hbm [thread:$0]  (%p3159_p10), %s3034_s20, 512, %s3039_s18, %s1718_s8, %s2568_s9, %s2568_s9, %s2569_s10  }
 0x4f1 PF: > { %s3160_s4 = sld [smem:[#allocation24_spill]]  ;;  %p3163_p3 = scmp.ge.s32.totalorder %s2551_s24, 2 }
 0x4f2   : > { %s3161_s23 = sld [smem:[#allocation26_spill]] }
 0x4f7   : > { %s1746_s30 = sand.u32 1, %s3160_s4  }
 0x4f8   : > { %p3162_p5 = scmp.ne.s32.totalorder %s3161_s23, 0  ;;  %s1747_s11 = scalar_lea.sflag [#allocation4], %s1746_s30 }
 0x4fa   : > { %p2178_p7 = pnand %p3163_p3, %p3162_p5 }
 0x4fc   : > { %p2179_p2 = pneg %p2178_p7 }
 0x4fe   : > { %2534 = dma.done.wait (%p2179_p2), %s1747_s11, 512  }
 0x4ff   : > { %2536 = vsyncadd (%p2179_p2), %s1747_s11, 4294966784  ;;  %s3164_s24 = sld [smem:[#allocation27_spill]]  ;;  %s3167_s21 = smov %s2543_s22 }
 0x500   : > { %s3165_s29 = sld [smem:[#allocation25_spill]] }
 0x501   : > { %s3166_s23 = sld [smem:[#allocation29_spill]] }
 0x505   : > { %p33_p13 = scmp.ge.s32.totalorder %s3164_s24, 4  }
 0x506   : > { %s3168_s22 = smov %s3165_s29 }
 0x507   :  { %35 = sbr.rel (!%p33_p13) target bundleno = 20 (0x14), region = 166 }
 0x50c   :  { %1752 = vsyncpa [#allocation3], 1 }
 0x50d   :  { %1754 = vsyncpa [#allocation3 + $0x1], 1 }
 0x50e   :  { %1755 = vsyncpa [#allocation6], 1 }
 0x50f   :  { %1757 = vsyncpa [#allocation6 + $0x1], 1 }
 0x510   :  { %1758 = vsyncpa [#allocation9], 1 }
 0x511   :  { %1760 = vsyncpa [#allocation9 + $0x1], 1 }
 0x512   :  { %1761 = vsyncpa [#allocation12], 1 }
 0x513   :  { %1762 = vsyncpa [#allocation15], 1 }
 0x514   :  { %1763 = vsyncpa [#allocation4], 1 }
 0x515   :  { %1765 = vsyncpa [#allocation4 + $0x1], 1 }

</bundles_post_ra>
